<compile_context>
chip_gen: v7x
topology: tpu7x:2x2x1
jax: 0.10.0
libtpu: 0.0.40
codegen_flags: <defaults>
</compile_context>

<pallas_src>
import jax
import jax.numpy as jnp
from jax.experimental import pallas as pl
from jax.experimental.pallas import tpu as pltpu


# ---------------------------------------------------------------------------
# Kernels
# ---------------------------------------------------------------------------
def _corr_tile_kernel(a_ref, b_ref, o_ref):
    """One batch, one HW_B lane-tile.

    a_ref : [1, C, HW_A]   (channels on sublanes, HW_A lane-dense)
    b_ref : [1, C, TN]
    o_ref : [1, HW_A, TN]
    """
    a = a_ref[0]                                   # [C, HW_A]
    bt = b_ref[0]                                  # [C, TN]
    # Contract over the channel axis (dim 0 of both operands) on the MXU
    # (transposed-LHS matmul), accumulate in f32.
    corr = jax.lax.dot_general(
        a, bt, (((0,), (0,)), ((), ())),
        preferred_element_type=jnp.float32)        # [HW_A, TN]
    corr = jnp.maximum(corr, 0.0)                  # ReLU
    # featureL2Norm over torch dim 1 == HW_A axis (axis 0 here); eps placed
    # inside the sqrt exactly like torch.pow(sum + eps, 0.5).  rsqrt rides the
    # EUP slot and the whole-tile op becomes a single broadcast multiply.
    inv = jax.lax.rsqrt(jnp.sum(corr * corr, axis=0, keepdims=True) + 1e-6)
    o_ref[0] = (corr * inv).astype(o_ref.dtype)


def _corr_packed_kernel(a_ref, b_ref, o_ref):
    """Small-map path (HW < 128): all batches packed into one grid step.

    a_ref : [B, C, HW]
    b_ref : [B, C, HW]
    o_ref : [B, HW, HW]
    """
    nb = a_ref.shape[0]
    for ib in range(nb):                           # static unroll, B is small
        a = a_ref[ib]                              # [C, HW]
        bt = b_ref[ib]                             # [C, HW]
        corr = jax.lax.dot_general(
            a, bt, (((0,), (0,)), ((), ())),
            preferred_element_type=jnp.float32)    # [HW, HW]
        corr = jnp.maximum(corr, 0.0)
        inv = jax.lax.rsqrt(jnp.sum(corr * corr, axis=0, keepdims=True) + 1e-6)
        o_ref[ib] = (corr * inv).astype(o_ref.dtype)


# ---------------------------------------------------------------------------
# Wrappers
# ---------------------------------------------------------------------------
def _block_bytes(hw, c, tn, in_bytes, out_bytes):
    # A, B and the output block are each double-buffered by the pipeline.
    return 2 * (hw * c * in_bytes + c * tn * in_bytes + hw * tn * out_bytes)


def _pick_tile_n(hw, c, in_bytes, out_bytes, budget_bytes=24 * 1024 * 1024):
    """Largest lane-dense (multiple of 128) TN dividing hw whose double-buffered
    blocks fit a VMEM budget sized for v7x's 64 MiB physical VMEM.  Falls back
    to the smallest divisor candidate (or full hw) if nothing fits/divides."""
    fallback = hw
    for tn in (4096, 2048, 1024, 512, 256, 128):
        if tn <= hw and hw % tn == 0:
            if _block_bytes(hw, c, tn, in_bytes, out_bytes) <= budget_bytes:
                return tn
            fallback = tn
    return fallback


def feature_correlation_single(x, *, compute_dtype=jnp.bfloat16,
                               out_dtype=jnp.float32):
    """x: [B, 2C, H, W] -> correlation tensor [B, H*W, H, W] ('3D' path)."""
    b, c2, h, w = x.shape
    c = c2 // 2
    hw = h * w
    feat_a = x[:, :c]
    feat_b = x[:, c:]
    # A flattened w-major (jA = wA*H + hA), channels kept on the sublane axis.
    a_t = jnp.transpose(feat_a, (0, 1, 3, 2)).reshape(b, c, hw).astype(compute_dtype)
    # B flattened h-major (iB = hB*W + wB).
    b_flat = feat_b.reshape(b, c, hw).astype(compute_dtype)

    in_bytes = jnp.dtype(compute_dtype).itemsize
    out_bytes = jnp.dtype(out_dtype).itemsize

    if hw >= 128:
        tn = _pick_tile_n(hw, c, in_bytes, out_bytes)
        need = _block_bytes(hw, c, tn, in_bytes, out_bytes)
        vmem_limit = int(min(max(2 * need, 16 * 1024 * 1024), 48 * 1024 * 1024))
        out = pl.pallas_call(
            _corr_tile_kernel,
            out_shape=jax.ShapeDtypeStruct((b, hw, hw), out_dtype),
            grid_spec=pltpu.PrefetchScalarGridSpec(
                num_scalar_prefetch=0,
                grid=(b, hw // tn),
                in_specs=[
                    # A block is constant along j (inner axis) -> not re-DMA'd.
                    pl.BlockSpec((1, c, hw), lambda i, j: (i, 0, 0)),
                    pl.BlockSpec((1, c, tn), lambda i, j: (i, 0, j)),
                ],
                out_specs=pl.BlockSpec((1, hw, tn), lambda i, j: (i, 0, j)),
            ),
            compiler_params=pltpu.CompilerParams(
                dimension_semantics=("parallel", "parallel"),
                vmem_limit_bytes=vmem_limit),
        )(a_t, b_flat)
    else:
        # hw < 128: one grid step over all batches (amortizes per-step overhead
        # for tiny maps whose output lane width is below 128).
        out = pl.pallas_call(
            _corr_packed_kernel,
            out_shape=jax.ShapeDtypeStruct((b, hw, hw), out_dtype),
            grid_spec=pltpu.PrefetchScalarGridSpec(
                num_scalar_prefetch=0,
                grid=(1,),
                in_specs=[
                    pl.BlockSpec((b, c, hw), lambda i: (0, 0, 0)),
                    pl.BlockSpec((b, c, hw), lambda i: (0, 0, 0)),
                ],
                out_specs=pl.BlockSpec((b, hw, hw), lambda i: (0, 0, 0)),
            ),
            compiler_params=pltpu.CompilerParams(
                dimension_semantics=("arbitrary",)),
        )(a_t, b_flat)

    # [B, HW_A, HW_B] -> [B, H*W, H, W]  (same layout as the torch 3D output;
    # contiguous reshape, no data movement).
    return out.reshape(b, hw, h, w)


def feature_correlation(ms_feature_list, *, compute_dtype=jnp.bfloat16,
                        out_dtype=jnp.float32):
    # Equivalent of FeatureCorrelation(shape='3D', normalization=True).forward
    # TODO(synk): the torch '3D' + outputflatten=True branch references undefined
    # hA/wA and calls .view on a non-contiguous tensor (it would crash); the
    # well-defined 3D output format [B, H*W, H, W] is produced here instead.
    return [feature_correlation_single(x, compute_dtype=compute_dtype,
                                       out_dtype=out_dtype)
            for x in ms_feature_list]


# ---------------------------------------------------------------------------
# Reference (pure JAX transcription of the torch semantics)
# ---------------------------------------------------------------------------
def _reference(x, compute_dtype=jnp.float32):
    """Torch 3D path + ReLU + featureL2Norm.  Inputs optionally rounded to
    compute_dtype to mirror the bf16-input / f32-accumulation MXU path."""
    b, c2, h, w = x.shape
    c = c2 // 2
    A = x[:, :c].astype(compute_dtype).astype(jnp.float32)
    B = x[:, c:].astype(compute_dtype).astype(jnp.float32)
    a_flat = jnp.transpose(A, (0, 1, 3, 2)).reshape(b, c, h * w)      # [b,c,hw_A]
    b_flat = B.reshape(b, c, h * w).transpose(0, 2, 1)                # [b,hw_B,c]
    mul = jnp.einsum('bic,bcj->bij', b_flat, a_flat)                  # [b,hw_B,hw_A]
    corr = mul.reshape(b, h, w, h * w).transpose(0, 3, 1, 2)          # [b,hw_A,h,w]
    corr = jnp.maximum(corr, 0.0)
    norm = jnp.sqrt(jnp.sum(corr ** 2, axis=1, keepdims=True) + 1e-6)
    return corr / norm


if __name__ == "__main__":
    key = jax.random.PRNGKey(0)
    k1, k2 = jax.random.split(key)
    # multi-scale feature list: NCHW, channels = 2*C (split in half inside)
    x1 = jax.random.normal(k1, (2, 8, 16, 16), dtype=jnp.float32)   # hw=256 -> tiled path
    x2 = jax.random.normal(k2, (2, 8, 8, 8), dtype=jnp.float32)     # hw=64  -> packed path
    ms_list = [x1, x2]

    # Default path: bf16 MXU inputs, f32 accumulation, f32 output.
    outs = feature_correlation(ms_list)
    outs = [jax.block_until_ready(o) for o in outs]
    for x, o in zip(ms_list, outs):
        ref = _reference(x, compute_dtype=jnp.bfloat16)
        assert o.shape == ref.shape, (o.shape, ref.shape)
        assert jnp.allclose(o, ref, atol=2e-3, rtol=2e-3), "bf16 path mismatch"

    # Full float32 path (matches torch float32 semantics, tighter tolerance).
    outs32 = feature_correlation(ms_list, compute_dtype=jnp.float32)
    outs32 = [jax.block_until_ready(o) for o in outs32]
    for x, o in zip(ms_list, outs32):
        ref = _reference(x, compute_dtype=jnp.float32)
        assert o.shape == ref.shape, (o.shape, ref.shape)
        assert jnp.allclose(o, ref, atol=1e-4, rtol=1e-4), "f32 path mismatch"

    print("KERNEL_OK")
</pallas_src>

<mosaic_0001>
module attributes {stable_mosaic.version = 11 : i64} {
  func.func @_corr_tile_kernel(%arg0: i32, %arg1: i32, %arg2: memref<1x4x256xbf16, #tpu.memory_space<vmem>>, %arg3: memref<1x4x256xbf16, #tpu.memory_space<vmem>>, %arg4: memref<1x256x256xf32, #tpu.memory_space<vmem>>) attributes {dimension_semantics = [#tpu.dimension_semantics<parallel>, #tpu.dimension_semantics<parallel>], iteration_bounds = array<i64: 2, 1>, scalar_prefetch = 0 : i64, scratch_operands = 0 : i64, tpu.core_type = #tpu.core_type<tc>, window_params = [{transform_indices = @transform_0, window_bounds = array<i64: 1, 4, 256>}, {transform_indices = @transform_1, window_bounds = array<i64: 1, 4, 256>}, {transform_indices = @transform_2, window_bounds = array<i64: 1, 256, 256>}]} {
    %c0 = arith.constant 0 : index
    %c0_0 = arith.constant 0 : index
    %c0_1 = arith.constant 0 : index
    %0 = vector.load %arg2[%c0, %c0_0, %c0_1] : memref<1x4x256xbf16, #tpu.memory_space<vmem>>, vector<1x4x256xbf16>
    %1 = vector.shape_cast %0 : vector<1x4x256xbf16> to vector<4x256xbf16>
    %c0_2 = arith.constant 0 : index
    %c0_3 = arith.constant 0 : index
    %c0_4 = arith.constant 0 : index
    %2 = vector.load %arg3[%c0_2, %c0_3, %c0_4] : memref<1x4x256xbf16, #tpu.memory_space<vmem>>, vector<1x4x256xbf16>
    %3 = vector.shape_cast %2 : vector<1x4x256xbf16> to vector<4x256xbf16>
    %cst = arith.constant dense<0.000000e+00> : vector<256x256xf32>
    %4 = tpu.matmul %1, %3, %cst {dimension_numbers = #tpu.dot_dimension_numbers<[0], [0], [1], [1], [0, 1, 1, 1], [], []>} : vector<4x256xbf16>, vector<4x256xbf16>, vector<256x256xf32> -> vector<256x256xf32>
    %cst_5 = arith.constant 0.000000e+00 : f32
    %5 = vector.broadcast %cst_5 : f32 to vector<256x256xf32>
    %6 = arith.maximumf %4, %5 : vector<256x256xf32>
    %7 = arith.mulf %6, %6 : vector<256x256xf32>
    %cst_6 = arith.constant dense<0.000000e+00> : vector<256xf32>
    %8 = vector.multi_reduction <add>, %7, %cst_6 [0] : vector<256x256xf32> to vector<256xf32>
    %9 = vector.shape_cast %8 : vector<256xf32> to vector<1x256xf32>
    %cst_7 = arith.constant 9.99999997E-7 : f32
    %10 = vector.broadcast %cst_7 : f32 to vector<1x256xf32>
    %11 = arith.addf %9, %10 : vector<1x256xf32>
    %12 = math.rsqrt %11 : vector<1x256xf32>
    %13 = vector.broadcast %12 : vector<1x256xf32> to vector<256x256xf32>
    %14 = arith.mulf %6, %13 : vector<256x256xf32>
    %c0_8 = arith.constant 0 : index
    %c0_9 = arith.constant 0 : index
    %c0_10 = arith.constant 0 : index
    %15 = vector.load %arg4[%c0_8, %c0_9, %c0_10] : memref<1x256x256xf32, #tpu.memory_space<vmem>>, vector<1x256x256xf32>
    %16 = vector.shape_cast %15 : vector<1x256x256xf32> to vector<256x256xf32>
    %17 = vector.shape_cast %14 : vector<256x256xf32> to vector<1x256x256xf32>
    tpu.vector_store %arg4[%c0_8, %c0_9, %c0_10], %17 {strides = array<i32>} : memref<1x256x256xf32, #tpu.memory_space<vmem>>, vector<1x256x256xf32>,
    return
  }
  func.func @transform_0(%arg0: i32, %arg1: i32) -> (i32, i32, i32) {
    %c0_i32 = arith.constant 0 : i32
    %c0_i32_0 = arith.constant 0 : i32
    %c0_i32_1 = arith.constant 0 : i32
    return %arg0, %c0_i32, %c0_i32_0 : i32, i32, i32
  }
  func.func @transform_1(%arg0: i32, %arg1: i32) -> (i32, i32, i32) {
    %c0_i32 = arith.constant 0 : i32
    %c0_i32_0 = arith.constant 0 : i32
    return %arg0, %c0_i32, %arg1 : i32, i32, i32
  }
  func.func @transform_2(%arg0: i32, %arg1: i32) -> (i32, i32, i32) {
    %c0_i32 = arith.constant 0 : i32
    %c0_i32_0 = arith.constant 0 : i32
    return %arg0, %c0_i32, %arg1 : i32, i32, i32
  }
}

</mosaic_0001>

<bundles_post_ra>
// kernel: tpu_custom_call.1
= control target key start
LH: loop header
LB: loop body
LE: loop exit
PB: predicated region body
PF: predicated region fallthrough
CT: control target
= control target key end

     0   :  { %7 = vsyncpa [#allocation3], 0  ;;  %s1950_s0 = inlined_call_operand.hbm [shape: bf16[2,4,256], index: 0, kind: input, shape index: {}]   ;;  %s1951_s1 = inlined_call_operand.hbm [shape: bf16[2,4,256], index: 1, kind: input, shape index: {}]   ;;  %s1952_s2 = inlined_call_operand.hbm [shape: f32[2,256,256], index: 2, kind: output, shape index: {}]  }
   0x1   :  { %9 = vsyncpa [#allocation3 + $0x1], 0 }
   0x2   :  { %10 = vsyncpa [#allocation6], 0 }
   0x3   :  { %12 = vsyncpa [#allocation6 + $0x1], 0 }
   0x4   :  { %13 = vsyncpa [#allocation4], 0 }
   0x5   :  { %15 = vsyncpa [#allocation4 + $0x1], 0  ;;  %s1268_s9 = smov 0   ;;  %s1270_s10 = smov 0  }
   0x6   :  { %s1272_s11 = smov 0   ;;  %s1274_s12 = smov 0  }
   0x7   :  { %s1276_s13 = smov 0   ;;  %s1278_s14 = smov 0  }
   0x8 LB: > { %s982_s15 = sadd.s32 4294967295, %s1245_s14   ;;  %s983_s16 = sadd.s32 4294967294, %s1245_s14   ;;  %s1245_s14 = sphi %s1278_s14, %s21_s14   ;;  %s1241_s13 = sphi %s1276_s13, %s2035_s13   ;;  %s1237_s12 = sphi %s1274_s12, %s2034_s12   ;;  %s1233_s11 = sphi %s1272_s11, %s2033_s11   ;;  %s1229_s10 = sphi %s1270_s10, %s2032_s10   ;;  %s1225_s9 = sphi %s1268_s9, %s2031_s9  }
   0x9   : > { %s33_s17 = sadd.s32 1, %s1241_s13  ;;  %s40_s18 = sadd.s32 1, %s1233_s11 }
   0xa   : > { %p35_p0 = scmp.ge.s32.totalorder %s33_s17, 2  ;;  %p47_p1 = scmp.ne.s32.totalorder %s1233_s11, %s1229_s10 }
   0xb   : > { %p48_p2 = scmp.eq.s32.totalorder %s1245_s14, 0  ;;  %p53_p3 = scmp.ne.s32.totalorder %s1229_s10, %s1225_s9 }
   0xc   : > { %s2037_s17 = smov (%p35_p0, %s33_s17), 0  ;;  %p54_p5 = scmp.eq.s32.totalorder %s982_s15, 0 }
   0xd   : > { %p1309_p4 = por %p48_p2, %p47_p1  ;;  %s37_s20 = ssub.s32 %s1241_s13, %s2037_s17 }
   0xe   : > { %p107_p6 = scmp.eq.s32.totalorder %s982_s15, 1  ;;  %p38_p7 = scmp.eq.s32.totalorder %s37_s20, 0 }
   0xf   : > { %p1315_p8 = por %p54_p5, %p53_p3  ;;  %p113_p10 = scmp.eq.s32.totalorder %s983_s16, 1 }
  0x10   : > { %p1319_p9 = por %p107_p6, %p47_p1  ;;  %p1042_p13 = scmp.lt.s32.totalorder %s1245_s14, 2 }
  0x11   : > { %s1977_s21 = scalar_select %p1315_p8, 1, 0 }
  0x12   : > { %s1978_s22 = scalar_select %p1319_p9, 1, 0 }
  0x13   : > { %s1324_s23 = scalar_select %p38_p7, %s1233_s11, %s40_s18  }
  0x14   : > { %p1326_p11 = por %p113_p10, %p53_p3  ;;  %s1333_s25 = sand.u32 1, %s1233_s11  }
  0x15   : > { %s986_s26 = sshll.u32 %s1333_s25, 2  ;;  %s1020_s27 = sshll.u32 %s1241_s13, 6 }
  0x16   : > { %s1979_s24 = scalar_select %p1326_p11, 1, 0 }
  0x17   : > { %s1342_s30 = scalar_lea.hbm %s1950_s0, %s1020_s27  ;;  %s137_s3 = scalar_lea.vmem [#allocation2], %s986_s26 }
  0x18   : > { %s145_s4 = sshll.u32 %s137_s3, 4  ;;  %p1350_p0 = pnand %p1042_p13, %p1309_p4  ;;  %s1346_s4 = int_to_ptr.vmem [resolvable:$true] %s145_s4 }
  0x19   : > { %s134_s6 = scalar_lea.sflag [#allocation3], %s1333_s25  ;;  %s1099_s7 = scalar_lea.hbm %s1342_s30, 64 }
  0x1a   : > { %p1100_p3 = scmp.ne.s32.totalorder %s1342_s30, %s1099_s7  ;;  %p1101_p5 = pneg %p1350_p0 }
  0x1b   : > { %s1104_s16 = scalar_lea.hbm %s1950_s0, 128  ;;  %p1105_p4 = scmp.lt.u32.totalorder %s1342_s30, %s1950_s0 }
  0x1c   : > { %p1102_p6 = pnand %p1101_p5, %p1100_p3  ;;  %p1106_p10 = scmp.lt.u32.totalorder %s1104_s16, %s1099_s7 }
  0x1d   : > { %p1108_p12 = scmp.lt.u32.totalorder %s1099_s7, %s1342_s30 }
  0x1e   : > { %p1103_p7 = pneg %p1102_p6  ;;  %p1107_p13 = por %p1106_p10, %p1105_p4 }
  0x20   : > { %p1109_p1 = por %p1108_p12, %p1107_p13 }
  0x22   : > { %p1110_p2 = pnand %p1109_p1, %p1103_p7 }
  0x24   : > { %1113 = shalt.err (!%p1110_p2)
}
  0x25   : > { %s1114_s20 = scalar_lea.vmem %s1346_s4, 64  ;;  %s1247_s28 = smov [#allocation2]  }
  0x26   : > { %p1115_p3 = scmp.ne.s32.totalorder %s1346_s4, %s1114_s20  ;;  %s1119_s29 = sshll.u32 %s1247_s28, 4  ;;  %s1120_s29 = int_to_ptr.vmem [resolvable:$false] %s1119_s29 }
  0x27   : > { %s1121_s3 = scalar_lea.vmem %s1120_s29, 128  ;;  %p1122_p9 = scmp.lt.s32.totalorder %s1346_s4, %s1120_s29 }
  0x28   : > { %p1117_p6 = pnand %p1115_p3, %p1101_p5  ;;  %p1123_p4 = scmp.lt.s32.totalorder %s1121_s3, %s1114_s20 }
  0x2a   : > { %p1118_p11 = pneg %p1117_p6  ;;  %p1124_p10 = por %p1123_p4, %p1122_p9 }
  0x2c   : > { %p1125_p12 = pnand %p1124_p10, %p1118_p11 }
  0x2e   : > { %1128 = shalt.err (!%p1125_p12)
}
  0x2f   : > { %1034 = dma.hbm_to_vmem [thread:$0]  (!%p1350_p0), %s1342_s30, 64, %s1346_s4, %s134_s6  }
  0x30   : > { %p1981_p1 = scmp.lt.s32.totalorder %s1245_s14, 3  ;;  %p1982_p2 = scmp.ge.s32.totalorder %s1245_s14, 1 }
  0x31   : > { %s1395_s16 = scalar_lea.hbm %s1951_s1, %s1020_s27  ;;  %s156_s18 = scalar_lea.vmem [#allocation5], %s986_s26 }
  0x32   : > { %p1386_p7 = pnand %p1982_p2, %p1981_p1  ;;  %s166_s19 = sshll.u32 %s156_s18, 4  ;;  %s167_s19 = int_to_ptr.vmem [resolvable:$true] %s166_s19 }
  0x33   : > { %s153_s30 = scalar_lea.sflag [#allocation6], %s1333_s25  ;;  %s1129_s4 = scalar_lea.hbm %s1395_s16, 64 }
  0x34   : > { %s1983_s7 = scalar_select %p1386_p7, 1, 0 }
  0x35   : > { %p1130_p9 = scmp.ne.s32.totalorder %s1395_s16, %s1129_s4  ;;  %s1134_s27 = scalar_lea.hbm %s1951_s1, 128 }
  0x36   : > { %p1135_p3 = scmp.lt.u32.totalorder %s1395_s16, %s1951_s1  ;;  %p1136_p6 = scmp.lt.u32.totalorder %s1134_s27, %s1129_s4 }
  0x37   : > { %p1132_p11 = pnand %p1130_p9, %p1101_p5  ;;  %p1138_p10 = scmp.lt.u32.totalorder %s1129_s4, %s1395_s16 }
  0x38   : > { %p1137_p4 = por %p1136_p6, %p1135_p3 }
  0x39   : > { %p1133_p13 = pneg %p1132_p11 }
  0x3a   : > { %p1139_p12 = por %p1138_p10, %p1137_p4 }
  0x3c   : > { %p1140_p1 = pnand %p1139_p12, %p1133_p13 }
  0x3e   : > { %1143 = shalt.err (!%p1140_p1)
}
  0x3f   : > { %s1144_s25 = scalar_lea.vmem %s167_s19, 64  ;;  %s1248_s26 = smov [#allocation5]  }
  0x40   : > { %p1145_p2 = scmp.ne.s32.totalorder %s167_s19, %s1144_s25  ;;  %s1149_s3 = sshll.u32 %s1248_s26, 4  ;;  %s1150_s3 = int_to_ptr.vmem [resolvable:$false] %s1149_s3 }
  0x41   : > { %s1151_s8 = scalar_lea.vmem %s1150_s3, 128  ;;  %p1152_p8 = scmp.lt.s32.totalorder %s167_s19, %s1150_s3 }
  0x42   : > { %p1147_p9 = pnand %p1145_p2, %p1101_p5  ;;  %p1153_p7 = scmp.lt.s32.totalorder %s1151_s8, %s1144_s25 }
  0x44   : > { %p1148_p11 = pneg %p1147_p9  ;;  %p1154_p3 = por %p1153_p7, %p1152_p8 }
  0x46   : > { %p1155_p6 = pnand %p1154_p3, %p1148_p11 }
  0x48   : > { %1158 = shalt.err (!%p1155_p6)
}
  0x49   : > { %1037 = dma.hbm_to_vmem [thread:$0]  (!%p1350_p0), %s1395_s16, 64, %s167_s19, %s153_s30  }
  0x4a   : > { %p1984_p13 = scmp.ne.s32.totalorder %s1983_s7, 0 }
  0x4c   : > { %175 = sbr.rel (%p1984_p13) target bundleno = 576 (0x240), region = 28 }
  0x53   : > { %s1422_s15 = sand.u32 1, %s1229_s10   ;;  %p1985_p5 = scmp.ne.s32.totalorder %s1977_s21, 0 }
  0x54   : > { %s993_s18 = sshll.u32 %s1422_s15, 2  ;;  %s178_s4 = scalar_lea.sflag [#allocation3], %s1422_s15 }
  0x55   : > { %s181_s6 = scalar_lea.vmem [#allocation2], %s993_s18 }
  0x56   : > { %1212 = dma.done.wait (%p1985_p5), %s178_s4, 64  }
  0x57   : > { %1214 = vsyncadd (%p1985_p5), %s178_s4, 4294967232  ;;  %s187_s5 = scalar_lea.sflag [#allocation6], %s1422_s15  ;;  %s190_s16 = scalar_lea.vmem [#allocation5], %s993_s18 }
  0x58   : > { %1216 = dma.done.wait (%p1985_p5), %s187_s5, 64  }
  0x59   : > { %1218 = vsyncadd (%p1985_p5), %s187_s5, 4294967232  ;;  %v1249_v0 = vmov 0   ;;  %vm322_vm0 = vcmask 1041408   ;;  %vm273_vm1 = vcmask 31744   ;;  %s995_s21 = sshll.u32 %s1422_s15, 9  ;;  %s1022_s19 = sshll.u32 %s1237_s12, 13 }
  0x5a   : > { %361 = vmatprep.mubr.bf16.mxu0 %v1249_v0  ;;  %441 = vmatprep.mubr.bf16.mxu1 %v1249_v0  ;;  %v996_v1 = vld.sshfl [vmem:[%s181_s6] sm:$0x33 pattern:$0x76325410]  ;;  %s1738_s7 = scalar_lea.vmem [#allocation7], %s995_s21  ;;  %s1879_s27 = scalar_lea.hbm %s1952_s2, %s1022_s19 }
  0x5b   : > { %232 = vxpose.xlu0.c.b16.start.end [1/1] (short) %v996_v1, 128  ;;  %v997_v2 = vld.sshfl [vmem:[%s190_s16] sm:$0x33 pattern:$0x76325410]  ;;  %v229_v5 = vcombine.high %v996_v1, %v996_v1  ;;  %s872_s30 = sshll.u32 %s1738_s7, 4  ;;  %s857_s28 = scalar_lea.sflag [#allocation4], %s1422_s15  ;;  %s1881_s30 = int_to_ptr.vmem [resolvable:$true] %s872_s30 }
  0x5c   : > { %v272_v3 = vcombine.high %v997_v2, %v997_v2  ;;  %v324_v4 = vsel %vm322_vm0, %v997_v2, 0  ;;  %s1159_s29 = scalar_lea.vmem %s1881_s30, 8192  ;;  %p2028_p0 = scmp.ne.s32.totalorder %s1978_s22, 0 }
  0x5d   : > { %p1160_p8 = scmp.ne.s32.totalorder %s1881_s30, %s1159_s29  ;;  %s1250_s25 = smov [#allocation7]  }
  0x5e   : > { %998 = vmatprep.subr.msk.bf16.mxu0 %vm322_vm0, %v272_v3  ;;  %1023 = vmatprep.subr.msk.bf16.mxu1 %vm322_vm0, %v272_v3  ;;  %s1163_s26 = sshll.u32 %s1250_s25, 4  ;;  %s1164_s26 = int_to_ptr.vmem [resolvable:$false] %s1163_s26 }
  0x5f   : > { %330 = vmatpush1.bf16.msra.mxu0 %v324_v4  ;;  %1024 = vmatpush1.bf16.msra.mxu1 %v324_v4  ;;  %p1161_p7 = pnand %p1160_p8, %p2028_p0  ;;  %s1165_s3 = scalar_lea.vmem %s1164_s26, 16384 }
  0x60   : > { %p1166_p10 = scmp.lt.s32.totalorder %s1881_s30, %s1164_s26  ;;  %p1167_p12 = scmp.lt.s32.totalorder %s1165_s3, %s1159_s29 }
  0x61   : > { %p1162_p4 = pneg %p1161_p7 }
  0x62   : > { %p1168_p1 = por %p1167_p12, %p1166_p10 }
  0x64   : > { %p1169_p2 = pnand %p1168_p1, %p1162_p4 }
  0x78   : > { %248 = vxpose.xlu0.c.b16.start.end [1/1] (short) %v229_v5, 128 }
  0xc1   : > { %v240_v6 = vpop.trf.xlu0 }
  0xc2   : > { %999 = vmatmul.mubr.msk.bf16.vlgmr.msra.gmra.mrb[0].mxu0 %vm273_vm1, %v240_v6 }
  0xc3   : > { %371 = vmatprep.mubr.bf16.mxu0 %v1249_v0 }
  0xc5   : > { %v241_v7 = vpop.trf.xlu0 }
  0xc9   : > { %v242_v8 = vpop.trf.xlu0 }
  0xca   : > { %1000 = vmatmul.mubr.msk.bf16.gmra.mrb[4].mxu0 %vm273_vm1, %v241_v7 }
  0xcb   : > { %381 = vmatprep.mubr.bf16.mxu0 %v1249_v0 }
  0xcd   : > { %v243_v9 = vpop.trf.xlu0 }
  0xd1   : > { %v244_v10 = vpop.trf.xlu0 }
  0xd2   : > { %1001 = vmatmul.mubr.msk.bf16.gmra.mrb[8].mxu0 %vm273_vm1, %v242_v8 }
  0xd3   : > { %391 = vmatprep.mubr.bf16.mxu0 %v1249_v0 }
  0xd5   : > { %v245_v11 = vpop.trf.xlu0 }
  0xd9   : > { %v246_v12 = vpop.trf.xlu0 }
  0xda   : > { %1002 = vmatmul.mubr.msk.bf16.gmra.mrb[12].mxu0 %vm273_vm1, %v243_v9 }
  0xdb   : > { %401 = vmatprep.mubr.bf16.mxu0 %v1249_v0 }
  0xdd   : > { %v247_v13 = vpop.trf.xlu0 }
  0xe1   : > { %v256_v14 = vpop.trf.xlu0 }
  0xe2   : > { %1003 = vmatmul.mubr.msk.bf16.gmra.mrb[16].mxu0 %vm273_vm1, %v244_v10  ;;  %1007 = vmatmul.mubr.msk.bf16.vlgmr.msra.gmra.mrb[0].mxu1 %vm273_vm1, %v256_v14 }
  0xe3   : > { %411 = vmatprep.mubr.bf16.mxu0 %v1249_v0  ;;  %451 = vmatprep.mubr.bf16.mxu1 %v1249_v0 }
  0xe5   : > { %v257_v15 = vpop.trf.xlu0 }
  0xe9   : > { %v258_v16 = vpop.trf.xlu0 }
  0xea   : > { %1004 = vmatmul.mubr.msk.bf16.gmra.mrb[20].mxu0 %vm273_vm1, %v245_v11  ;;  %1008 = vmatmul.mubr.msk.bf16.gmra.mrb[4].mxu1 %vm273_vm1, %v257_v15 }
  0xeb   : > { %421 = vmatprep.mubr.bf16.mxu0 %v1249_v0  ;;  %461 = vmatprep.mubr.bf16.mxu1 %v1249_v0 }
  0xed   : > { %v259_v17 = vpop.trf.xlu0 }
  0xf1   : > { %v260_v18 = vpop.trf.xlu0 }
  0xf2   : > { %1005 = vmatmul.mubr.msk.bf16.gmra.mrb[24].mxu0 %vm273_vm1, %v246_v12  ;;  %1009 = vmatmul.mubr.msk.bf16.gmra.mrb[8].mxu1 %vm273_vm1, %v258_v16 }
  0xf3   : > { %431 = vmatprep.mubr.bf16.mxu0 %v1249_v0  ;;  %471 = vmatprep.mubr.bf16.mxu1 %v1249_v0 }
  0xf5   : > { %v261_v19 = vpop.trf.xlu0 }
  0xf9   : > { %v262_v20 = vpop.trf.xlu0 }
  0xfa   : > { %1006 = vmatmul.mubr.msk.bf16.gmra.mrb[28].mxu0 %vm273_vm1, %v247_v13  ;;  %1010 = vmatmul.mubr.msk.bf16.gmra.mrb[12].mxu1 %vm273_vm1, %v259_v17 }
  0xfb   : > { %481 = vmatprep.mubr.bf16.mxu1 %v1249_v0 }
  0xfd   : > { %v263_v21 = vpop.trf.xlu0 }
 0x102   : > { %1011 = vmatmul.mubr.msk.bf16.gmra.mrb[16].mxu1 %vm273_vm1, %v260_v18 }
 0x103   : > { %491 = vmatprep.mubr.bf16.mxu1 %v1249_v0 }
 0x10a   : > { %1012 = vmatmul.mubr.msk.bf16.gmra.mrb[20].mxu1 %vm273_vm1, %v261_v19 }
 0x10b   : > { %501 = vmatprep.mubr.bf16.mxu1 %v1249_v0 }
 0x112   : > { %1013 = vmatmul.mubr.msk.bf16.gmra.mrb[24].mxu1 %vm273_vm1, %v262_v20 }
 0x113   : > { %511 = vmatprep.mubr.bf16.mxu1 %v1249_v0 }
 0x11a   : > { %1014 = vmatmul.mubr.msk.bf16.gmra.mrb[28].mxu1 %vm273_vm1, %v263_v21 }
 0x195   : > { %v363_v22 = vpop.f32.mrb[0].mxu0 }
 0x196   : > { %v365_v23 = vpop.f32.mrb[1].mxu0  ;;  %v1455_v33 = vmax.f32 %v363_v22, 0.0 }
 0x197   : > { %v367_v24 = vpop.f32.mrb[2].mxu0  ;;  %v1459_v36 = vmax.f32 %v365_v23, 0.0 }
 0x198   : > { %v369_v25 = vpop.f32.mrb[3].mxu0  ;;  %v1451_v30 = vmax.f32 %v367_v24, 0.0  ;;  %v586_v42 = vmul.f32 %v1455_v33, %v1455_v33 }
 0x199   : > { %v1453_v31 = vmax.f32 %v369_v25, 0.0  ;;  %v587_v45 = vmul.f32 %v1459_v36, %v1459_v36 }
 0x19a   : > { %v588_v39 = vmul.f32 %v1451_v30, %v1451_v30 }
 0x19b   : > { %v589_v41 = vmul.f32 %v1453_v31, %v1453_v31 }
 0x19c   : > { %v650_v48 = vadd.f32 %v588_v39, %v586_v42 }
 0x19d   : > { %v373_v26 = vpop.f32.mrb[4].mxu0  ;;  %v687_v50 = vadd.f32 %v589_v41, %v587_v45 }
 0x19e   : > { %v375_v27 = vpop.f32.mrb[5].mxu0  ;;  %v1457_v34 = vmax.f32 %v373_v26, 0.0 }
 0x19f   : > { %v377_v28 = vpop.f32.mrb[6].mxu0  ;;  %v1461_v37 = vmax.f32 %v375_v27, 0.0 }
 0x1a0   : > { %v379_v29 = vpop.f32.mrb[7].mxu0  ;;  %v590_v43 = vmul.f32 %v1457_v34, %v1457_v34  ;;  %v1471_v44 = vmax.f32 %v377_v28, 0.0 }
 0x1a1   : > { %v591_v46 = vmul.f32 %v1461_v37, %v1461_v37  ;;  %v1477_v47 = vmax.f32 %v379_v29, 0.0 }
 0x1a2   : > { %v651_v53 = vadd.f32 %v650_v48, %v590_v43  ;;  %v592_v54 = vmul.f32 %v1471_v44, %v1471_v44 }
 0x1a3   : > { %v688_v56 = vadd.f32 %v687_v50, %v591_v46  ;;  %v593_v57 = vmul.f32 %v1477_v47, %v1477_v47 }
 0x1a4   : > { %v652_v0 = vadd.f32 %v651_v53, %v592_v54 }
 0x1a5   : > { %v383_v32 = vpop.f32.mrb[8].mxu0  ;;  %v689_v2 = vadd.f32 %v688_v56, %v593_v57 }
 0x1a6   : > { %v385_v35 = vpop.f32.mrb[9].mxu0  ;;  %v1479_v49 = vmax.f32 %v383_v32, 0.0 }
 0x1a7   : > { %v387_v38 = vpop.f32.mrb[10].mxu0  ;;  %v1481_v51 = vmax.f32 %v385_v35, 0.0 }
 0x1a8   : > { %v389_v40 = vpop.f32.mrb[11].mxu0  ;;  %v594_v59 = vmul.f32 %v1479_v49, %v1479_v49  ;;  %v1489_v60 = vmax.f32 %v387_v38, 0.0 }
 0x1a9   : > { %v595_v62 = vmul.f32 %v1481_v51, %v1481_v51  ;;  %v1493_v63 = vmax.f32 %v389_v40, 0.0 }
 0x1aa   : > { %v653_v4 = vadd.f32 %v652_v0, %v594_v59  ;;  %v596_v5 = vmul.f32 %v1489_v60, %v1489_v60 }
 0x1ab   : > { %v690_v6 = vadd.f32 %v689_v2, %v595_v62  ;;  %v597_v7 = vmul.f32 %v1493_v63, %v1493_v63 }
 0x1ac   : > { %v654_v18 = vadd.f32 %v653_v4, %v596_v5 }
 0x1ad   : > { %v393_v52 = vpop.f32.mrb[12].mxu0  ;;  %v691_v22 = vadd.f32 %v690_v6, %v597_v7 }
 0x1ae   : > { %v395_v55 = vpop.f32.mrb[13].mxu0  ;;  %v1495_v1 = vmax.f32 %v393_v52, 0.0 }
 0x1af   : > { %v397_v58 = vpop.f32.mrb[14].mxu0  ;;  %v1497_v3 = vmax.f32 %v395_v55, 0.0 }
 0x1b0   : > { %v399_v61 = vpop.f32.mrb[15].mxu0  ;;  %v598_v10 = vmul.f32 %v1495_v1, %v1495_v1  ;;  %v1507_v11 = vmax.f32 %v397_v58, 0.0 }
 0x1b1   : > { %v599_v14 = vmul.f32 %v1497_v3, %v1497_v3  ;;  %v1513_v15 = vmax.f32 %v399_v61, 0.0 }
 0x1b2   : > { %v655_v24 = vadd.f32 %v654_v18, %v598_v10  ;;  %v600_v25 = vmul.f32 %v1507_v11, %v1507_v11 }
 0x1b3   : > { %v692_v26 = vadd.f32 %v691_v22, %v599_v14  ;;  %v601_v27 = vmul.f32 %v1513_v15, %v1513_v15 }
 0x1b4   : > { %v656_v40 = vadd.f32 %v655_v24, %v600_v25 }
 0x1b5   : > { %v403_v8 = vpop.f32.mrb[16].mxu0  ;;  %v1503_v9 = vpop.f32.mrb[0].mxu1  ;;  %v693_v45 = vadd.f32 %v692_v26, %v601_v27 }
 0x1b6   : > { %v405_v12 = vpop.f32.mrb[17].mxu0  ;;  %v1509_v13 = vpop.f32.mrb[1].mxu1  ;;  %v1517_v19 = vmax.f32 %v403_v8, 0.0 }
 0x1b7   : > { %v407_v16 = vpop.f32.mrb[18].mxu0  ;;  %v1515_v17 = vpop.f32.mrb[2].mxu1  ;;  %v1521_v23 = vmax.f32 %v405_v12, 0.0 }
 0x1b8   : > { %v409_v20 = vpop.f32.mrb[19].mxu0  ;;  %v1519_v21 = vpop.f32.mrb[3].mxu1  ;;  %v602_v28 = vmul.f32 %v1517_v19, %v1517_v19  ;;  %v1529_v29 = vmax.f32 %v407_v16, 0.0 }
 0x1b9   : > { %v603_v32 = vmul.f32 %v1521_v23, %v1521_v23  ;;  %v1533_v35 = vmax.f32 %v409_v20, 0.0 }
 0x1ba   : > { %v657_v52 = vadd.f32 %v656_v40, %v602_v28  ;;  %v604_v53 = vmul.f32 %v1529_v29, %v1529_v29 }
 0x1bb   : > { %v694_v56 = vadd.f32 %v693_v45, %v603_v32  ;;  %v605_v57 = vmul.f32 %v1533_v35, %v1533_v35 }
 0x1bc   : > { %v658_v0 = vadd.f32 %v657_v52, %v604_v53 }
 0x1bd   : > { %v413_v38 = vpop.f32.mrb[20].mxu0  ;;  %v1535_v39 = vpop.f32.mrb[4].mxu1  ;;  %v695_v2 = vadd.f32 %v694_v56, %v605_v57 }
 0x1be   : > { %v1537_v41 = vmax.f32 %v413_v38, 0.0  ;;  %v415_v42 = vpop.f32.mrb[21].mxu0  ;;  %v1539_v43 = vpop.f32.mrb[5].mxu1 }
 0x1bf   : > { %v1541_v46 = vmax.f32 %v415_v42, 0.0  ;;  %v417_v48 = vpop.f32.mrb[22].mxu0  ;;  %v1543_v50 = vpop.f32.mrb[6].mxu1 }
 0x1c0   : > { %v419_v54 = vpop.f32.mrb[23].mxu0  ;;  %v1547_v55 = vpop.f32.mrb[7].mxu1  ;;  %v606_v58 = vmul.f32 %v1537_v41, %v1537_v41  ;;  %v1553_v59 = vmax.f32 %v417_v48, 0.0 }
 0x1c1   : > { %1986 = vst [vmem:[#allocation11_spill] sm:$0xff] %v1541_v46  ;;  %v607_v61 = vmul.f32 %v1541_v46, %v1541_v46  ;;  %v1557_v62 = vmax.f32 %v419_v54, 0.0 }
 0x1c2   : > { %v659_v6 = vadd.f32 %v658_v0, %v606_v58  ;;  %v608_v7 = vmul.f32 %v1553_v59, %v1553_v59 }
 0x1c3   : > { %1987 = vst [vmem:[#allocation12_spill] sm:$0xff] %v1557_v62  ;;  %v696_v14 = vadd.f32 %v695_v2, %v607_v61  ;;  %v609_v16 = vmul.f32 %v1557_v62, %v1557_v62 }
 0x1c4   : > { %v660_v38 = vadd.f32 %v659_v6, %v608_v7 }
 0x1c5   : > { %v423_v4 = vpop.f32.mrb[24].mxu0  ;;  %v1559_v5 = vpop.f32.mrb[8].mxu1  ;;  %v697_v40 = vadd.f32 %v696_v14, %v609_v16 }
 0x1c6   : > { %v1563_v8 = vmax.f32 %v423_v4, 0.0  ;;  %v425_v10 = vpop.f32.mrb[25].mxu0  ;;  %v465_v12 = vpop.f32.mrb[9].mxu1  ;;  %v1586_v4 = vmax.f32 %v1503_v9, 0.0  ;;  %v1600_v9 = vmax.f32 %v1515_v17, 0.0 }
 0x1c7   : > { %v1567_v18 = vmax.f32 %v425_v10, 0.0  ;;  %v427_v20 = vpop.f32.mrb[26].mxu0  ;;  %v467_v22 = vpop.f32.mrb[10].mxu1 }
 0x1c8   : > { %v610_v24 = vmul.f32 %v1563_v8, %v1563_v8  ;;  %v1571_v25 = vmax.f32 %v427_v20, 0.0  ;;  %v429_v26 = vpop.f32.mrb[27].mxu0  ;;  %v469_v27 = vpop.f32.mrb[11].mxu1  ;;  %v1593_v20 = vmax.f32 %v1509_v13, 0.0 }
 0x1c9   : > { %1988 = vst [vmem:[#allocation13_spill] sm:$0xff] %v1567_v18  ;;  %v611_v28 = vmul.f32 %v1567_v18, %v1567_v18  ;;  %v1575_v32 = vmax.f32 %v429_v26, 0.0 }
 0x1ca   : > { %v661_v42 = vadd.f32 %v660_v38, %v610_v24  ;;  %v612_v45 = vmul.f32 %v1571_v25, %v1571_v25  ;;  %1991 = vst [vmem:[#allocation16_spill] sm:$0xff] %v1593_v20  ;;  %v619_v17 = vmul.f32 %v1593_v20, %v1593_v20 }
 0x1cb   : > { %1989 = vst [vmem:[#allocation14_spill] sm:$0xff] %v1575_v32  ;;  %v698_v48 = vadd.f32 %v697_v40, %v611_v28  ;;  %v613_v52 = vmul.f32 %v1575_v32, %v1575_v32 }
 0x1cc   : > { %v662_v6 = vadd.f32 %v661_v42, %v612_v45  ;;  %v1605_v42 = vmax.f32 %v1519_v21, 0.0 }
 0x1cd   : > { %v433_v53 = vpop.f32.mrb[28].mxu0  ;;  %v473_v54 = vpop.f32.mrb[12].mxu1  ;;  %v699_v24 = vadd.f32 %v698_v48, %v613_v52  ;;  %v618_v48 = vmul.f32 %v1586_v4, %v1586_v4  ;;  %v1612_v52 = vmax.f32 %v1535_v39, 0.0 }
 0x1ce   : > { %v1581_v56 = vmax.f32 %v433_v53, 0.0  ;;  %v435_v57 = vpop.f32.mrb[29].mxu0  ;;  %v475_v58 = vpop.f32.mrb[13].mxu1  ;;  %1993 = vst [vmem:[#allocation18_spill] sm:$0xff] %v1605_v42  ;;  %v621_v39 = vmul.f32 %v1605_v42, %v1605_v42  ;;  %v1640_v42 = vmax.f32 %v467_v22, 0.0 }
 0x1cf   : > { %v1583_v61 = vmax.f32 %v435_v57, 0.0  ;;  %v437_v0 = vpop.f32.mrb[30].mxu0  ;;  %v477_v2 = vpop.f32.mrb[14].mxu1  ;;  %v1617_v57 = vmax.f32 %v1539_v43, 0.0  ;;  %v622_v43 = vmul.f32 %v1612_v52, %v1612_v52 }
 0x1d0   : > { %v614_v7 = vmul.f32 %v1581_v56, %v1581_v56  ;;  %v1590_v10 = vmax.f32 %v437_v0, 0.0  ;;  %v439_v14 = vpop.f32.mrb[31].mxu0  ;;  %v479_v16 = vpop.f32.mrb[15].mxu1 }
 0x1d1   : > { %1990 = vst [vmem:[#allocation15_spill] sm:$0xff] %v1583_v61  ;;  %v615_v26 = vmul.f32 %v1583_v61, %v1583_v61  ;;  %v1597_v28 = vmax.f32 %v439_v14, 0.0  ;;  %1994 = vst [vmem:[#allocation19_spill] sm:$0xff] %v1617_v57 }
 0x1d2   : > { %v663_v38 = vadd.f32 %v662_v6, %v614_v7  ;;  %v616_v40 = vmul.f32 %v1590_v10, %v1590_v10  ;;  %v620_v6 = vmul.f32 %v1600_v9, %v1600_v9  ;;  %v1622_v7 = vmax.f32 %v1543_v50, 0.0 }
 0x1d3   : > { %1992 = vst [vmem:[#allocation17_spill] sm:$0xff] %v1597_v28  ;;  %v700_v45 = vadd.f32 %v699_v24, %v615_v26  ;;  %v617_v13 = vmul.f32 %v1597_v28, %v1597_v28  ;;  %v1627_v26 = vmax.f32 %v1547_v55, 0.0  ;;  %v623_v50 = vmul.f32 %v1617_v57, %v1617_v57 }
 0x1d4   : > { %v664_v53 = vadd.f32 %v663_v38, %v616_v40  ;;  %v624_v55 = vmul.f32 %v1622_v7, %v1622_v7  ;;  %v1644_v28 = vmax.f32 %v469_v27, 0.0 }
 0x1d5   : > { %v701_v0 = vadd.f32 %v700_v45, %v617_v13  ;;  %v483_v21 = vpop.f32.mrb[16].mxu1  ;;  %1995 = vst [vmem:[#allocation20_spill] sm:$0xff] %v1627_v26  ;;  %v1632_v45 = vmax.f32 %v1559_v5, 0.0 }
 0x1d6   : > { %v665_v14 = vadd.f32 %v664_v53, %v618_v48  ;;  %v485_v24 = vpop.f32.mrb[17].mxu1  ;;  %v1636_v48 = vmax.f32 %v465_v12, 0.0  ;;  %1997 = vst [vmem:[#allocation22_spill] sm:$0xff] %v1644_v28 }
 0x1d7   : > { %v702_v38 = vadd.f32 %v701_v0, %v619_v17  ;;  %v487_v40 = vpop.f32.mrb[18].mxu1  ;;  %v625_v0 = vmul.f32 %v1627_v26, %v1627_v26 }
 0x1d8   : > { %v666_v13 = vadd.f32 %v665_v14, %v620_v6  ;;  %v489_v20 = vpop.f32.mrb[19].mxu1  ;;  %1996 = vst [vmem:[#allocation21_spill] sm:$0xff] %v1636_v48  ;;  %v626_v6 = vmul.f32 %v1632_v45, %v1632_v45  ;;  %v1648_v14 = vmax.f32 %v473_v54, 0.0  ;;  %v1660_v54 = vmax.f32 %v479_v16, 0.0 }
 0x1d9   : > { %v703_v53 = vadd.f32 %v702_v38, %v621_v39  ;;  %v627_v39 = vmul.f32 %v1636_v48, %v1636_v48  ;;  %v1652_v38 = vmax.f32 %v475_v58, 0.0 }
 0x1da   : > { %v667_v17 = vadd.f32 %v666_v13, %v622_v43  ;;  %v628_v43 = vmul.f32 %v1640_v42, %v1640_v42  ;;  %v1656_v13 = vmax.f32 %v477_v2, 0.0  ;;  %1999 = vst [vmem:[#allocation24_spill] sm:$0xff] %v1660_v54  ;;  %v630_v58 = vmul.f32 %v1648_v14, %v1648_v14 }
 0x1db   : > { %v704_v5 = vadd.f32 %v703_v53, %v623_v50  ;;  %1998 = vst [vmem:[#allocation23_spill] sm:$0xff] %v1652_v38  ;;  %v629_v53 = vmul.f32 %v1644_v28, %v1644_v28  ;;  %v631_v2 = vmul.f32 %v1652_v38, %v1652_v38  ;;  %v1672_v28 = vmax.f32 %v487_v40, 0.0 }
 0x1dc   : > { %v668_v12 = vadd.f32 %v667_v17, %v624_v55 }
 0x1dd   : > { %v705_v22 = vadd.f32 %v704_v5, %v625_v0  ;;  %v493_v57 = vpop.f32.mrb[20].mxu1  ;;  %v1664_v0 = vmax.f32 %v483_v21, 0.0 }
 0x1de   : > { %v669_v27 = vadd.f32 %v668_v12, %v626_v6  ;;  %v495_v50 = vpop.f32.mrb[21].mxu1  ;;  %v1668_v6 = vmax.f32 %v485_v24, 0.0  ;;  %v632_v12 = vmul.f32 %v1656_v13, %v1656_v13  ;;  %v1680_v38 = vmax.f32 %v493_v57, 0.0 }
 0x1df   : > { %v706_v55 = vadd.f32 %v705_v22, %v627_v39  ;;  %v497_v17 = vpop.f32.mrb[22].mxu1  ;;  %v633_v39 = vmul.f32 %v1660_v54, %v1660_v54 }
 0x1e0   : > { %v670_v48 = vadd.f32 %v669_v27, %v628_v43  ;;  %v499_v5 = vpop.f32.mrb[23].mxu1  ;;  %2000 = vst [vmem:[#allocation25_spill] sm:$0xff] %v1668_v6  ;;  %v1676_v43 = vmax.f32 %v489_v20, 0.0  ;;  %v634_v27 = vmul.f32 %v1664_v0, %v1664_v0 }
 0x1e1   : > { %v707_v26 = vadd.f32 %v706_v55, %v629_v53  ;;  %v635_v53 = vmul.f32 %v1668_v6, %v1668_v6  ;;  %v1684_v55 = vmax.f32 %v495_v50, 0.0  ;;  %v1692_v57 = vmax.f32 %v499_v5, 0.0 }
 0x1e2   : > { %v671_v16 = vadd.f32 %v670_v48, %v630_v58  ;;  %2001 = vst [vmem:[#allocation26_spill] sm:$0xff] %v1676_v43  ;;  %v636_v58 = vmul.f32 %v1672_v28, %v1672_v28  ;;  %v638_v50 = vmul.f32 %v1680_v38, %v1680_v38 }
 0x1e3   : > { %v708_v22 = vadd.f32 %v707_v26, %v631_v2  ;;  %2002 = vst [vmem:[#allocation27_spill] sm:$0xff] %v1684_v55  ;;  %v1688_v26 = vmax.f32 %v497_v17, 0.0  ;;  %2003 = vst [vmem:[#allocation28_spill] sm:$0xff] %v1692_v57  ;;  %v639_v17 = vmul.f32 %v1684_v55, %v1684_v55 }
 0x1e4   : > { %v672_v21 = vadd.f32 %v671_v16, %v632_v12  ;;  %v637_v12 = vmul.f32 %v1676_v43, %v1676_v43 }
 0x1e5   : > { %v709_v24 = vadd.f32 %v708_v22, %v633_v39  ;;  %v503_v40 = vpop.f32.mrb[24].mxu1 }
 0x1e6   : > { %v673_v48 = vadd.f32 %v672_v21, %v634_v27  ;;  %v505_v20 = vpop.f32.mrb[25].mxu1  ;;  %v1696_v22 = vmax.f32 %v503_v40, 0.0 }
 0x1e7   : > { %v710_v2 = vadd.f32 %v709_v24, %v635_v53  ;;  %v507_v16 = vpop.f32.mrb[26].mxu1  ;;  %v1700_v6 = vmax.f32 %v505_v20, 0.0  ;;  %v640_v53 = vmul.f32 %v1688_v26, %v1688_v26 }
 0x1e8   : > { %v674_v39 = vadd.f32 %v673_v48, %v636_v58  ;;  %v509_v21 = vpop.f32.mrb[27].mxu1  ;;  %v1704_v5 = vmax.f32 %v507_v16, 0.0  ;;  %v641_v48 = vmul.f32 %v1692_v57, %v1692_v57 }
 0x1e9   : > { %v711_v27 = vadd.f32 %v710_v2, %v637_v12  ;;  %2004 = vst [vmem:[#allocation29_spill] sm:$0xff] %v1700_v6  ;;  %v1708_v58 = vmax.f32 %v509_v21, 0.0  ;;  %v642_v2 = vmul.f32 %v1696_v22, %v1696_v22  ;;  %v643_v20 = vmul.f32 %v1700_v6, %v1700_v6 }
 0x1ea   : > { %v675_v24 = vadd.f32 %v674_v39, %v638_v50  ;;  %v644_v16 = vmul.f32 %v1704_v5, %v1704_v5 }
 0x1eb   : > { %v712_v43 = vadd.f32 %v711_v27, %v639_v17  ;;  %2005 = vst [vmem:[#allocation30_spill] sm:$0xff] %v1708_v58  ;;  %v645_v21 = vmul.f32 %v1708_v58, %v1708_v58 }
 0x1ec   : > { %v676_v40 = vadd.f32 %v675_v24, %v640_v53 }
 0x1ed   : > { %v713_v12 = vadd.f32 %v712_v43, %v641_v48  ;;  %v513_v39 = vpop.f32.mrb[28].mxu1 }
 0x1ee   : > { %v677_v50 = vadd.f32 %v676_v40, %v642_v2  ;;  %v1716_v55 = vmax.f32 %v513_v39, 0.0  ;;  %v515_v27 = vpop.f32.mrb[29].mxu1 }
 0x1ef   : > { %v714_v17 = vadd.f32 %v713_v12, %v643_v20  ;;  %v1720_v24 = vmax.f32 %v515_v27, 0.0  ;;  %v517_v53 = vpop.f32.mrb[30].mxu1 }
 0x1f0   : > { %v678_v57 = vadd.f32 %v677_v50, %v644_v16  ;;  %v646_v43 = vmul.f32 %v1716_v55, %v1716_v55  ;;  %v584_v48 = vmax.f32 %v517_v53, 0.0  ;;  %v519_v6 = vpop.f32.mrb[31].mxu1 }
 0x1f1   : > { %2006 = vst [vmem:[#allocation31_spill] sm:$0xff] %v1720_v24  ;;  %v715_v40 = vadd.f32 %v714_v17, %v645_v21  ;;  %v647_v2 = vmul.f32 %v1720_v24, %v1720_v24  ;;  %v1726_v39 = vmax.f32 %v519_v6, 0.0 }
 0x1f2   : > { %v679_v54 = vadd.f32 %v678_v57, %v646_v43  ;;  %v648_v12 = vmul.f32 %v584_v48, %v584_v48 }
 0x1f3   : > { %v716_v20 = vadd.f32 %v715_v40, %v647_v2  ;;  %v649_v27 = vmul.f32 %v1726_v39, %v1726_v39 }
 0x1f4   : > { %v680_v58 = vadd.f32 %v679_v54, %v648_v12 }
 0x1f5   : > { %v717_v61 = vadd.f32 %v716_v20, %v649_v27  ;;  %v2010_v20 = vld [vmem:[#allocation14_spill] sm:$0xff] }
 0x1f6   : > { %v681_v50 = vrot.slane %v680_v58, 4 }
 0x1f7   : > { %v718_v16 = vrot.slane %v717_v61, 4 }
 0x1f8   : > { %v682_v32 = vadd.f32 %v681_v50, %v680_v58  ;;  %v2012_v50 = vld [vmem:[#allocation17_spill] sm:$0xff] }
 0x1f9   : > { %v719_v53 = vadd.f32 %v718_v16, %v717_v61 }
 0x1fa   : > { %v683_v18 = vrot.slane %v682_v32, 2 }
 0x1fb   : > { %v720_v17 = vrot.slane %v719_v53, 2 }
 0x1fc   : > { %v684_v21 = vadd.f32 %v683_v18, %v682_v32 }
 0x1fd   : > { %v721_v62 = vadd.f32 %v720_v17, %v719_v53  ;;  %v2013_v53 = vld [vmem:[#allocation16_spill] sm:$0xff] }
 0x1fe   : > { %v685_v24 = vrot.slane %v684_v21, 1 }
 0x1ff   : > { %v722_v6 = vrot.slane %v721_v62, 1 }
 0x200   : > { %v686_v46 = vadd.f32 %v685_v24, %v684_v21  ;;  %v2014_v21 = vld [vmem:[#allocation18_spill] sm:$0xff] }
 0x201   : > { %v723_v43 = vadd.f32 %v722_v6, %v721_v62 }
 0x202   : > { %v724_v57 = vadd.f32 1e-06, %v686_v46 }
 0x203   : > { %v725_v40 = vadd.f32 1e-06, %v723_v43 }
 0x204   : > { %1095 = vrsqrt.f32 %v724_v57  ;;  %v2015_v57 = vld [vmem:[#allocation19_spill] sm:$0xff] }
 0x205   : > { %1097 = vrsqrt.f32 %v725_v40  ;;  %v2016_v40 = vld [vmem:[#allocation20_spill] sm:$0xff] }
 0x20e   : > { %v1096_v54 = vpop.eup %1095 }
 0x20f   : > { %v790_v2 = vmul.f32 %v1096_v54, %v584_v48  ;;  %v728_v12 = vmul.f32 %v1096_v54, %v1455_v33  ;;  %v730_v58 = vmul.f32 %v1096_v54, %v1451_v30  ;;  %v732_v61 = vmul.f32 %v1096_v54, %v1457_v34  ;;  %v1764_v62 = vpop.eup %1097 }
 0x210   : > { %v734_v18 = vmul.f32 %v1096_v54, %v1471_v44  ;;  %v736_v32 = vmul.f32 %v1096_v54, %v1479_v49  ;;  %v738_v24 = vmul.f32 %v1096_v54, %v1489_v60  ;;  %v740_v46 = vmul.f32 %v1096_v54, %v1495_v1 }
 0x211   : > { %854 = vst [vmem:[%s1738_s7 + $0x1f0] sm:$0xff] %v790_v2  ;;  %v742_v30 = vmul.f32 %v1096_v54, %v1507_v11  ;;  %v744_v33 = vmul.f32 %v1096_v54, %v1517_v19  ;;  %v746_v34 = vmul.f32 %v1096_v54, %v1529_v29  ;;  %v748_v44 = vmul.f32 %v1096_v54, %v1537_v41  ;;  %v2017_v2 = vld [vmem:[#allocation21_spill] sm:$0xff] }
 0x212   : > { %792 = vst [vmem:[%s1738_s7] sm:$0xff] %v728_v12  ;;  %794 = vst [vmem:[%s1738_s7 + $0x10] sm:$0xff] %v730_v58  ;;  %v750_v49 = vmul.f32 %v1096_v54, %v1553_v59  ;;  %v752_v60 = vmul.f32 %v1096_v54, %v1563_v8  ;;  %v754_v1 = vmul.f32 %v1096_v54, %v1571_v25  ;;  %v2018_v58 = vld [vmem:[#allocation22_spill] sm:$0xff] }
 0x213   : > { %796 = vst [vmem:[%s1738_s7 + $0x20] sm:$0xff] %v732_v61  ;;  %v756_v11 = vmul.f32 %v1096_v54, %v1581_v56  ;;  %798 = vst [vmem:[%s1738_s7 + $0x30] sm:$0xff] %v734_v18  ;;  %v758_v19 = vmul.f32 %v1096_v54, %v1590_v10  ;;  %v760_v29 = vmul.f32 %v1096_v54, %v1586_v4  ;;  %v2019_v18 = vld [vmem:[#allocation23_spill] sm:$0xff] }
 0x214   : > { %800 = vst [vmem:[%s1738_s7 + $0x40] sm:$0xff] %v736_v32  ;;  %802 = vst [vmem:[%s1738_s7 + $0x50] sm:$0xff] %v738_v24  ;;  %v762_v41 = vmul.f32 %v1096_v54, %v1600_v9  ;;  %v764_v59 = vmul.f32 %v1096_v54, %v1612_v52  ;;  %v766_v8 = vmul.f32 %v1096_v54, %v1622_v7  ;;  %v2020_v24 = vld [vmem:[#allocation24_spill] sm:$0xff] }
 0x215   : > { %804 = vst [vmem:[%s1738_s7 + $0x60] sm:$0xff] %v740_v46  ;;  %806 = vst [vmem:[%s1738_s7 + $0x70] sm:$0xff] %v742_v30  ;;  %v768_v25 = vmul.f32 %v1096_v54, %v1632_v45  ;;  %v770_v56 = vmul.f32 %v1096_v54, %v1640_v42  ;;  %v772_v4 = vmul.f32 %v1096_v54, %v1648_v14  ;;  %v2021_v30 = vld [vmem:[#allocation25_spill] sm:$0xff] }
 0x216   : > { %808 = vst [vmem:[%s1738_s7 + $0x80] sm:$0xff] %v744_v33  ;;  %810 = vst [vmem:[%s1738_s7 + $0x90] sm:$0xff] %v746_v34  ;;  %v774_v10 = vmul.f32 %v1096_v54, %v1656_v13  ;;  %v776_v9 = vmul.f32 %v1096_v54, %v1664_v0  ;;  %v778_v52 = vmul.f32 %v1096_v54, %v1672_v28  ;;  %v2022_v34 = vld [vmem:[#allocation26_spill] sm:$0xff] }
 0x217   : > { %812 = vst [vmem:[%s1738_s7 + $0xa0] sm:$0xff] %v748_v44  ;;  %814 = vst [vmem:[%s1738_s7 + $0xb0] sm:$0xff] %v750_v49  ;;  %v780_v7 = vmul.f32 %v1096_v54, %v1680_v38  ;;  %v782_v42 = vmul.f32 %v1096_v54, %v1688_v26  ;;  %v784_v45 = vmul.f32 %v1096_v54, %v1696_v22  ;;  %v2023_v49 = vld [vmem:[#allocation27_spill] sm:$0xff] }
 0x218   : > { %816 = vst [vmem:[%s1738_s7 + $0xc0] sm:$0xff] %v752_v60  ;;  %818 = vst [vmem:[%s1738_s7 + $0xd0] sm:$0xff] %v754_v1  ;;  %v786_v14 = vmul.f32 %v1096_v54, %v1704_v5  ;;  %v788_v13 = vmul.f32 %v1096_v54, %v1716_v55  ;;  %v791_v28 = vmul.f32 %v1764_v62, %v1726_v39  ;;  %v2008_v5 = vld [vmem:[#allocation12_spill] sm:$0xff]  ;;  %v2009_v39 = vld [vmem:[#allocation13_spill] sm:$0xff] }
 0x219   : > { %820 = vst [vmem:[%s1738_s7 + $0xe0] sm:$0xff] %v756_v11  ;;  %822 = vst [vmem:[%s1738_s7 + $0xf0] sm:$0xff] %v758_v19  ;;  %v729_v38 = vmul.f32 %v1764_v62, %v1459_v36  ;;  %v731_v0 = vmul.f32 %v1764_v62, %v1453_v31  ;;  %v733_v55 = vmul.f32 %v1764_v62, %v1461_v37  ;;  %v2024_v1 = vld [vmem:[#allocation28_spill] sm:$0xff]  ;;  %v2025_v19 = vld [vmem:[#allocation29_spill] sm:$0xff] }
 0x21a   : > { %824 = vst [vmem:[%s1738_s7 + $0x100] sm:$0xff] %v760_v29  ;;  %826 = vst [vmem:[%s1738_s7 + $0x110] sm:$0xff] %v762_v41  ;;  %v735_v26 = vmul.f32 %v1764_v62, %v1477_v47  ;;  %v737_v22 = vmul.f32 %v1764_v62, %v1481_v51  ;;  %v739_v36 = vmul.f32 %v1764_v62, %v1493_v63  ;;  %v2007_v63 = vld [vmem:[#allocation11_spill] sm:$0xff]  ;;  %v2026_v41 = vld [vmem:[#allocation30_spill] sm:$0xff] }
 0x21b   : > { %828 = vst [vmem:[%s1738_s7 + $0x120] sm:$0xff] %v764_v59  ;;  %830 = vst [vmem:[%s1738_s7 + $0x130] sm:$0xff] %v766_v8  ;;  %v741_v31 = vmul.f32 %v1764_v62, %v1497_v3  ;;  %v743_v37 = vmul.f32 %v1764_v62, %v1513_v15  ;;  %v745_v47 = vmul.f32 %v1764_v62, %v1521_v23  ;;  %v2027_v8 = vld [vmem:[#allocation31_spill] sm:$0xff] }
 0x21c   : > { %832 = vst [vmem:[%s1738_s7 + $0x140] sm:$0xff] %v768_v25  ;;  %834 = vst [vmem:[%s1738_s7 + $0x150] sm:$0xff] %v770_v56  ;;  %v747_v51 = vmul.f32 %v1764_v62, %v1533_v35  ;;  %v749_v3 = vmul.f32 %v1764_v62, %v2007_v63  ;;  %v751_v48 = vmul.f32 %v1764_v62, %v2008_v5  ;;  %v2011_v35 = vld [vmem:[#allocation15_spill] sm:$0xff] }
 0x21d   : > { %836 = vst [vmem:[%s1738_s7 + $0x160] sm:$0xff] %v772_v4  ;;  %838 = vst [vmem:[%s1738_s7 + $0x170] sm:$0xff] %v774_v10  ;;  %v753_v15 = vmul.f32 %v1764_v62, %v2009_v39  ;;  %v755_v23 = vmul.f32 %v1764_v62, %v2010_v20  ;;  %v757_v27 = vmul.f32 %v1764_v62, %v2011_v35 }
 0x21e   : > { %840 = vst [vmem:[%s1738_s7 + $0x180] sm:$0xff] %v776_v9  ;;  %842 = vst [vmem:[%s1738_s7 + $0x190] sm:$0xff] %v778_v52  ;;  %v759_v16 = vmul.f32 %v1764_v62, %v2012_v50  ;;  %v761_v17 = vmul.f32 %v1764_v62, %v2013_v53  ;;  %v763_v6 = vmul.f32 %v1764_v62, %v2014_v21 }
 0x21f   : > { %844 = vst [vmem:[%s1738_s7 + $0x1a0] sm:$0xff] %v780_v7  ;;  %846 = vst [vmem:[%s1738_s7 + $0x1b0] sm:$0xff] %v782_v42  ;;  %v765_v43 = vmul.f32 %v1764_v62, %v2015_v57  ;;  %v767_v54 = vmul.f32 %v1764_v62, %v2016_v40  ;;  %v769_v12 = vmul.f32 %v1764_v62, %v2017_v2 }
 0x220   : > { %848 = vst [vmem:[%s1738_s7 + $0x1c0] sm:$0xff] %v784_v45  ;;  %850 = vst [vmem:[%s1738_s7 + $0x1d0] sm:$0xff] %v786_v14  ;;  %v771_v61 = vmul.f32 %v1764_v62, %v2018_v58  ;;  %v773_v32 = vmul.f32 %v1764_v62, %v2019_v18  ;;  %v775_v46 = vmul.f32 %v1764_v62, %v2020_v24 }
 0x221   : > { %852 = vst [vmem:[%s1738_s7 + $0x1e0] sm:$0xff] %v788_v13  ;;  %855 = vst [vmem:[%s1738_s7 + $0x1f8] sm:$0xff] %v791_v28  ;;  %v777_v33 = vmul.f32 %v1764_v62, %v2021_v30  ;;  %v779_v44 = vmul.f32 %v1764_v62, %v2022_v34  ;;  %v781_v60 = vmul.f32 %v1764_v62, %v2023_v49 }
 0x222   : > { %793 = vst [vmem:[%s1738_s7 + $0x8] sm:$0xff] %v729_v38  ;;  %795 = vst [vmem:[%s1738_s7 + $0x18] sm:$0xff] %v731_v0  ;;  %v783_v11 = vmul.f32 %v1764_v62, %v2024_v1  ;;  %v785_v29 = vmul.f32 %v1764_v62, %v2025_v19  ;;  %v787_v59 = vmul.f32 %v1764_v62, %v2026_v41 }
 0x223   : > { %797 = vst [vmem:[%s1738_s7 + $0x28] sm:$0xff] %v733_v55  ;;  %799 = vst [vmem:[%s1738_s7 + $0x38] sm:$0xff] %v735_v26  ;;  %v789_v25 = vmul.f32 %v1764_v62, %v2027_v8 }
 0x224   : > { %801 = vst [vmem:[%s1738_s7 + $0x48] sm:$0xff] %v737_v22  ;;  %803 = vst [vmem:[%s1738_s7 + $0x58] sm:$0xff] %v739_v36 }
 0x225   : > { %805 = vst [vmem:[%s1738_s7 + $0x68] sm:$0xff] %v741_v31  ;;  %807 = vst [vmem:[%s1738_s7 + $0x78] sm:$0xff] %v743_v37 }
 0x226   : > { %809 = vst [vmem:[%s1738_s7 + $0x88] sm:$0xff] %v745_v47  ;;  %811 = vst [vmem:[%s1738_s7 + $0x98] sm:$0xff] %v747_v51 }
 0x227   : > { %813 = vst [vmem:[%s1738_s7 + $0xa8] sm:$0xff] %v749_v3  ;;  %815 = vst [vmem:[%s1738_s7 + $0xb8] sm:$0xff] %v751_v48 }
 0x228   : > { %817 = vst [vmem:[%s1738_s7 + $0xc8] sm:$0xff] %v753_v15  ;;  %819 = vst [vmem:[%s1738_s7 + $0xd8] sm:$0xff] %v755_v23 }
 0x229   : > { %821 = vst [vmem:[%s1738_s7 + $0xe8] sm:$0xff] %v757_v27  ;;  %823 = vst [vmem:[%s1738_s7 + $0xf8] sm:$0xff] %v759_v16 }
 0x22a   : > { %825 = vst [vmem:[%s1738_s7 + $0x108] sm:$0xff] %v761_v17  ;;  %827 = vst [vmem:[%s1738_s7 + $0x118] sm:$0xff] %v763_v6 }
 0x22b   : > { %829 = vst [vmem:[%s1738_s7 + $0x128] sm:$0xff] %v765_v43  ;;  %831 = vst [vmem:[%s1738_s7 + $0x138] sm:$0xff] %v767_v54 }
 0x22c   : > { %833 = vst [vmem:[%s1738_s7 + $0x148] sm:$0xff] %v769_v12  ;;  %835 = vst [vmem:[%s1738_s7 + $0x158] sm:$0xff] %v771_v61 }
 0x22d   : > { %837 = vst [vmem:[%s1738_s7 + $0x168] sm:$0xff] %v773_v32  ;;  %839 = vst [vmem:[%s1738_s7 + $0x178] sm:$0xff] %v775_v46 }
 0x22e   : > { %841 = vst [vmem:[%s1738_s7 + $0x188] sm:$0xff] %v777_v33  ;;  %843 = vst [vmem:[%s1738_s7 + $0x198] sm:$0xff] %v779_v44 }
 0x22f   : > { %845 = vst [vmem:[%s1738_s7 + $0x1a8] sm:$0xff] %v781_v60  ;;  %847 = vst [vmem:[%s1738_s7 + $0x1b8] sm:$0xff] %v783_v11 }
 0x230   : > { %849 = vst [vmem:[%s1738_s7 + $0x1c8] sm:$0xff] %v785_v29  ;;  %851 = vst [vmem:[%s1738_s7 + $0x1d8] sm:$0xff] %v787_v59 }
 0x231   : > { %853 = vst [vmem:[%s1738_s7 + $0x1e8] sm:$0xff] %v789_v25 }
 0x232   : > { %1172 = shalt.err (!%p1169_p2)
}
 0x233   : > { %s1173_s8 = scalar_lea.hbm %s1879_s27, 8192  ;;  %s1177_s6 = scalar_lea.hbm %s1952_s2, 16384 }
 0x234   : > { %p1174_p9 = scmp.ne.s32.totalorder %s1879_s27, %s1173_s8  ;;  %p1178_p6 = scmp.lt.u32.totalorder %s1879_s27, %s1952_s2 }
 0x235   : > { %p1179_p13 = scmp.lt.u32.totalorder %s1177_s6, %s1173_s8  ;;  %p1181_p8 = scmp.lt.u32.totalorder %s1173_s8, %s1879_s27 }
 0x236   : > { %p1175_p11 = pnand %p1174_p9, %p2028_p0 }
 0x237   : > { %p1180_p5 = por %p1179_p13, %p1178_p6 }
 0x238   : > { %p1176_p3 = pneg %p1175_p11 }
 0x239   : > { %p1182_p7 = por %p1181_p8, %p1180_p5 }
 0x23b   : > { %p1183_p4 = pnand %p1182_p7, %p1176_p3 }
 0x23d   : > { %1186 = shalt.err (!%p1183_p4)
}
 0x23e   : > { %s1251_s21 = smov 256   ;;  %s1252_s7 = smov 16  }
 0x23f   : > { %1029 = dma.vmem_to_hbm [thread:$0]  (%p2028_p0), %s1881_s30, 8192, %s1879_s27, %s857_s28, %s1251_s21, %s1251_s21, %s1252_s7  }
 0x240 PF: > { %s887_s19 = sand.u32 1, %s1225_s9   ;;  %p2029_p10 = scmp.ne.s32.totalorder %s1979_s24, 0 }
 0x241   : > { %p2030_p12 = scmp.ge.s32.totalorder %s1245_s14, 2  ;;  %s888_s12 = scalar_lea.sflag [#allocation4], %s887_s19 }
 0x243   : > { %p1039_p1 = pnand %p2030_p12, %p2029_p10 }
 0x245   : > { %1220 = dma.done.wait (!%p1039_p1), %s888_s12, 8192  }
 0x246   : > { %1222 = vsyncadd (!%p1039_p1), %s888_s12, 4294959104  ;;  %s21_s14 = sadd.s32 1, %s1245_s14   ;;  %s2031_s9 = smov %s1229_s10 }
 0x247   : > { %p18_p2 = scmp.ge.s32.totalorder %s21_s14, 4   ;;  %s2032_s10 = smov %s1233_s11 }
 0x248   : > { %s2033_s11 = smov %s1324_s23  ;;  %s2034_s12 = smov %s1241_s13 }
 0x249   : > { %s2035_s13 = smov %s2037_s17  ;;  %20 = sbr.rel (!%p18_p2) target bundleno = 8 (0x8), region = 86 }
 0x250   :  { %893 = vsyncpa [#allocation3], 1 }
 0x251   :  { %895 = vsyncpa [#allocation3 + $0x1], 1 }
 0x252   :  { %896 = vsyncpa [#allocation6], 1 }
 0x253   :  { %898 = vsyncpa [#allocation6 + $0x1], 1 }
 0x254   :  { %899 = vsyncpa [#allocation4], 1 }
 0x255   :  { %901 = vsyncpa [#allocation4 + $0x1], 1 }

</bundles_post_ra>
